<compile_context>
chip_gen: v7x
topology: tpu7x:2x2x1
jax: 0.10.0
libtpu: 0.0.40
codegen_flags: <defaults>
</compile_context>

<pallas_src>
import math

import jax
import jax.numpy as jnp
from jax.experimental import pallas as pl
from jax.experimental.pallas import tpu as pltpu


def _generator_layer_kernel(x_ref, w_ref, gb_ref, o_ref):
    # x_ref:  (B, F_in)   bf16 -- same block every feature tile (single buffer)
    # w_ref:  (TN, F_in)  bf16 -- weight row slab (no transpose needed)
    # gb_ref: (2, TN)     f32  -- row 0 = gamma, row 1 = beta
    # o_ref:  (B, TN)     f32
    x = x_ref[...]
    w = w_ref[...]

    # Linear on the MXU: contract F_in of x with F_in of W -> (B, TN), f32 acc.
    # The nn.Linear bias is omitted: train-mode BatchNorm subtracts the batch
    # mean, which contains the bias, so the output is numerically identical.
    y = jax.lax.dot_general(
        x, w,
        dimension_numbers=(((1,), (1,)), ((), ())),
        preferred_element_type=jnp.float32)

    # BatchNorm1d, training mode: biased batch statistics over the batch dim.
    # Two-pass (mean, then centered sum-of-squares) kept for accuracy.
    inv_b = 1.0 / y.shape[0]
    mean = jnp.sum(y, axis=0, keepdims=True) * inv_b
    centered = y - mean
    var = jnp.sum(centered * centered, axis=0, keepdims=True) * inv_b

    # Fold gamma into the inverse std on the (1, TN) row before broadcasting.
    scale = jax.lax.rsqrt(var + 1e-5) * gb_ref[0:1, :]
    y_bn = centered * scale + gb_ref[1:2, :]

    # LeakyReLU (negative_slope = 0.01) without a compare+select.
    o_ref[...] = jnp.maximum(y_bn, 0.01 * y_bn).astype(o_ref.dtype)


def _vmem_budget_bytes():
    """VMEM working-set budget with headroom, generation-aware."""
    try:
        physical = int(pltpu.get_tpu_info().vmem_capacity_bytes)
    except Exception:
        physical = 64 << 20  # conservative (v7x per-TensorCore size)
    return max(16 << 20, int(physical * 0.6))


def _pick_feature_tile(f_out_p, f_in, batch, w_bytes, budget):
    """Largest lane-dense feature tile whose working set fits the budget.

    Prefers tiles that give >= 2 grid steps so v7x's two TensorCores can split
    the feature axis.  Returns (tile, w_buffer_count).
    """
    candidates = [t for t in (2048, 1024, 512, 256, 128) if t <= f_out_p]
    if not candidates:
        candidates = [128]

    def working_set(tn, w_bufs):
        w = w_bufs * f_in * tn * w_bytes       # pipelined W slabs
        xb = batch * f_in * w_bytes            # x, single-buffered
        ob = 2 * batch * tn * 4                # f32 output, double-buffered
        gb = 2 * 2 * 8 * tn * 4                # (2,TN) pads to 8 sublanes, x2 bufs
        return w + xb + ob + gb

    for tn in candidates:
        if f_out_p % tn == 0 and f_out_p // tn >= 2 and working_set(tn, 2) <= budget:
            n_tiles = f_out_p // tn
            # Deepen the W pipeline when per-tile compute is short (small B)
            # and the extra slab still fits.
            w_bufs = 3 if (n_tiles >= 3 and batch <= 256
                           and working_set(tn, 3) <= budget) else 2
            return tn, w_bufs
    for tn in candidates:
        if f_out_p % tn == 0 and working_set(tn, 2) <= budget:
            return tn, 2
    return 128, 2


def generator_layer(x, weight, bias, gamma, beta, *, compute_dtype=jnp.bfloat16):
    """x: (B, F_in); weight: (F_out, F_in); bias/gamma/beta: (F_out,)."""
    del bias  # cancels exactly under train-mode BatchNorm (see kernel note)
    B, f_in = x.shape
    f_out = weight.shape[0]

    # Pad F_out to a multiple of 128: keeps the output lane-dense (unmasked
    # vst) and the tiling uniform.  Padded features come out exactly 0 and are
    # sliced off below (gamma/beta padding = 0 -> no NaNs from var = 0).
    f_out_p = ((f_out + 127) // 128) * 128
    if f_out_p != f_out:
        pad = f_out_p - f_out
        weight = jnp.pad(weight, ((0, pad), (0, 0)))
        gamma = jnp.pad(gamma, (0, pad))
        beta = jnp.pad(beta, (0, pad))

    w_bytes = jnp.dtype(compute_dtype).itemsize
    budget = _vmem_budget_bytes()
    tn, w_bufs = _pick_feature_tile(f_out_p, f_in, B, w_bytes, budget)
    grid = (f_out_p // tn,)

    # Cast the streamed operands once, outside the kernel (halves W traffic).
    x_c = x.astype(compute_dtype)
    w_c = weight.astype(compute_dtype)                         # (F_out, F_in)
    gb = jnp.stack([gamma, beta], axis=0).astype(jnp.float32)  # (2, F_out)

    cost = pl.CostEstimate(
        flops=2 * B * f_in * f_out_p,
        transcendentals=0,
        bytes_accessed=(B * f_in * w_bytes
                        + f_in * f_out_p * w_bytes
                        + B * f_out_p * 4
                        + 2 * f_out_p * 4))

    out = pl.pallas_call(
        _generator_layer_kernel,
        out_shape=jax.ShapeDtypeStruct((B, f_out_p), jnp.float32),
        grid_spec=pltpu.PrefetchScalarGridSpec(
            num_scalar_prefetch=0,
            grid=grid,
            in_specs=[
                # x: constant index map -> single buffer frees VMEM for W.
                pl.BlockSpec((B, f_in), lambda i: (0, 0),
                             pipeline_mode=pl.Buffered(1)),
                # W row slab, streamed & pipelined (2- or 3-deep).
                pl.BlockSpec((tn, f_in), lambda i: (i, 0),
                             pipeline_mode=pl.Buffered(w_bufs)),
                # [gamma; beta] merged into one small block per tile.
                pl.BlockSpec((2, tn), lambda i: (0, i)),
            ],
            out_specs=pl.BlockSpec((B, tn), lambda i: (0, i)),
        ),
        compiler_params=pltpu.CompilerParams(
            # Feature tiles are fully independent (per-feature BN stats).
            dimension_semantics=("parallel",),
            vmem_limit_bytes=int(budget),
        ),
        cost_estimate=cost,
    )(x_c, w_c, gb)

    return out[:, :f_out] if f_out_p != f_out else out


def _reference(x, weight, bias, gamma, beta):
    # Full PyTorch semantics (incl. the linear bias, which train-mode BN absorbs).
    y = jnp.dot(x, weight.T, precision=jax.lax.Precision.HIGHEST) + bias
    mean = jnp.mean(y, axis=0, keepdims=True)
    var = jnp.mean((y - mean) ** 2, axis=0, keepdims=True)
    y = (y - mean) / jnp.sqrt(var + 1e-5) * gamma + beta
    return jnp.where(y >= 0, y, 0.01 * y)


if __name__ == "__main__":
    key = jax.random.PRNGKey(0)
    k_x, k_w, k_b = jax.random.split(key, 3)

    B, in_features, out_features = 16, 64, 256   # small, lane-dense F_out

    x = jax.random.normal(k_x, (B, in_features), dtype=jnp.float32)

    # nn.Linear weight: xavier_uniform_ init (deterministic via PRNGKey)
    bound_w = math.sqrt(6.0 / (in_features + out_features))
    weight = jax.random.uniform(
        k_w, (out_features, in_features), dtype=jnp.float32,
        minval=-bound_w, maxval=bound_w)
    # nn.Linear bias: uniform(-1/sqrt(fan_in), 1/sqrt(fan_in))
    bound_b = 1.0 / math.sqrt(in_features)
    bias = jax.random.uniform(
        k_b, (out_features,), dtype=jnp.float32,
        minval=-bound_b, maxval=bound_b)
    # BatchNorm1d affine params at init
    gamma = jnp.ones((out_features,), dtype=jnp.float32)
    beta = jnp.zeros((out_features,), dtype=jnp.float32)

    out = generator_layer(x, weight, bias, gamma, beta)
    out = jax.block_until_ready(out)

    ref = _reference(x, weight, bias, gamma, beta)
    assert out.shape == (B, out_features)
    max_err = float(jnp.max(jnp.abs(out - ref)))
    # bf16 operand stream (f32 accumulation / f32 BN epilogue) vs an f32
    # HIGHEST-precision reference -> tolerance intentionally loosened.
    assert jnp.allclose(out, ref, atol=5e-2, rtol=5e-2), max_err

    print("KERNEL_OK")
</pallas_src>

<mosaic_0001>
module attributes {stable_mosaic.version = 11 : i64} {
  func.func @_generator_layer_kernel(%arg0: i32, %arg1: memref<16x64xbf16, #tpu.memory_space<vmem>>, %arg2: memref<128x64xbf16, #tpu.memory_space<vmem>>, %arg3: memref<2x128xf32, #tpu.memory_space<vmem>>, %arg4: memref<16x128xf32, #tpu.memory_space<vmem>>) attributes {dimension_semantics = [#tpu.dimension_semantics<parallel>], iteration_bounds = array<i64: 2>, scalar_prefetch = 0 : i64, scratch_operands = 0 : i64, tpu.core_type = #tpu.core_type<tc>, window_params = [{pipeline_mode = #tpu.pipeline_mode<synchronous>, transform_indices = @transform_0, window_bounds = array<i64: 16, 64>}, {pipeline_mode = #tpu.pipeline_mode<double_buffered>, transform_indices = @transform_1, window_bounds = array<i64: 128, 64>}, {transform_indices = @transform_2, window_bounds = array<i64: 2, 128>}, {transform_indices = @transform_3, window_bounds = array<i64: 16, 128>}]} {
    %c0 = arith.constant 0 : index
    %c0_0 = arith.constant 0 : index
    %0 = vector.load %arg1[%c0, %c0_0] : memref<16x64xbf16, #tpu.memory_space<vmem>>, vector<16x64xbf16>
    %c0_1 = arith.constant 0 : index
    %c0_2 = arith.constant 0 : index
    %1 = vector.load %arg2[%c0_1, %c0_2] : memref<128x64xbf16, #tpu.memory_space<vmem>>, vector<128x64xbf16>
    %cst = arith.constant dense<0.000000e+00> : vector<16x128xf32>
    %2 = tpu.matmul %0, %1, %cst {dimension_numbers = #tpu.dot_dimension_numbers<[1], [1], [0], [0], [0, 0, 1, 0], [], []>} : vector<16x64xbf16>, vector<128x64xbf16>, vector<16x128xf32> -> vector<16x128xf32>
    %cst_3 = arith.constant dense<0.000000e+00> : vector<128xf32>
    %3 = vector.multi_reduction <add>, %2, %cst_3 [0] : vector<16x128xf32> to vector<128xf32>
    %4 = vector.shape_cast %3 : vector<128xf32> to vector<1x128xf32>
    %cst_4 = arith.constant 6.250000e-02 : f32
    %5 = vector.broadcast %cst_4 : f32 to vector<1x128xf32>
    %6 = arith.mulf %4, %5 : vector<1x128xf32>
    %7 = vector.broadcast %6 : vector<1x128xf32> to vector<16x128xf32>
    %8 = arith.subf %2, %7 : vector<16x128xf32>
    %9 = arith.mulf %8, %8 : vector<16x128xf32>
    %cst_5 = arith.constant dense<0.000000e+00> : vector<128xf32>
    %10 = vector.multi_reduction <add>, %9, %cst_5 [0] : vector<16x128xf32> to vector<128xf32>
    %11 = vector.shape_cast %10 : vector<128xf32> to vector<1x128xf32>
    %cst_6 = arith.constant 6.250000e-02 : f32
    %12 = vector.broadcast %cst_6 : f32 to vector<1x128xf32>
    %13 = arith.mulf %11, %12 : vector<1x128xf32>
    %cst_7 = arith.constant 9.99999974E-6 : f32
    %14 = vector.broadcast %cst_7 : f32 to vector<1x128xf32>
    %15 = arith.addf %13, %14 : vector<1x128xf32>
    %16 = math.rsqrt %15 : vector<1x128xf32>
    %c0_8 = arith.constant 0 : index
    %c0_9 = arith.constant 0 : index
    %17 = vector.load %arg3[%c0_8, %c0_9] : memref<2x128xf32, #tpu.memory_space<vmem>>, vector<1x128xf32>
    %18 = arith.mulf %16, %17 : vector<1x128xf32>
    %19 = vector.broadcast %18 : vector<1x128xf32> to vector<16x128xf32>
    %20 = arith.mulf %8, %19 : vector<16x128xf32>
    %c1 = arith.constant 1 : index
    %c0_10 = arith.constant 0 : index
    %21 = vector.load %arg3[%c1, %c0_10] : memref<2x128xf32, #tpu.memory_space<vmem>>, vector<1x128xf32>
    %22 = vector.broadcast %21 : vector<1x128xf32> to vector<16x128xf32>
    %23 = arith.addf %20, %22 : vector<16x128xf32>
    %cst_11 = arith.constant 0.00999999977 : f32
    %24 = vector.broadcast %cst_11 : f32 to vector<16x128xf32>
    %25 = arith.mulf %24, %23 : vector<16x128xf32>
    %26 = arith.maximumf %23, %25 : vector<16x128xf32>
    %c0_12 = arith.constant 0 : index
    %c0_13 = arith.constant 0 : index
    %27 = vector.load %arg4[%c0_12, %c0_13] : memref<16x128xf32, #tpu.memory_space<vmem>>, vector<16x128xf32>
    tpu.vector_store %arg4[%c0_12, %c0_13], %26 {strides = array<i32>} : memref<16x128xf32, #tpu.memory_space<vmem>>, vector<16x128xf32>,
    return
  }
  func.func @transform_0(%arg0: i32) -> (i32, i32) {
    %c0_i32 = arith.constant 0 : i32
    %c0_i32_0 = arith.constant 0 : i32
    %c0_i32_1 = arith.constant 0 : i32
    return %c0_i32, %c0_i32_0 : i32, i32
  }
  func.func @transform_1(%arg0: i32) -> (i32, i32) {
    %c0_i32 = arith.constant 0 : i32
    %c0_i32_0 = arith.constant 0 : i32
    return %arg0, %c0_i32 : i32, i32
  }
  func.func @transform_2(%arg0: i32) -> (i32, i32) {
    %c0_i32 = arith.constant 0 : i32
    %c0_i32_0 = arith.constant 0 : i32
    return %c0_i32, %arg0 : i32, i32
  }
  func.func @transform_3(%arg0: i32) -> (i32, i32) {
    %c0_i32 = arith.constant 0 : i32
    %c0_i32_0 = arith.constant 0 : i32
    return %c0_i32, %arg0 : i32, i32
  }
}

</mosaic_0001>

<bundles_post_ra>
// kernel: tpu_custom_call.1
= control target key start
LH: loop header
LB: loop body
LE: loop exit
PB: predicated region body
PF: predicated region fallthrough
CT: control target
= control target key end

     0   :  { %8 = vsyncpa [#allocation3], 0  ;;  %s767_s0 = inlined_call_operand.vmem [shape: bf16[16,64], index: 0, kind: input, shape index: {}]   ;;  %s768_s1 = inlined_call_operand.vmem [shape: bf16[256,64], index: 1, kind: input, shape index: {}]   ;;  %s769_s2 = inlined_call_operand.vmem [shape: f32[2,256], index: 2, kind: input, shape index: {}]   ;;  %s770_s3 = inlined_call_operand.hbm [shape: f32[16,256], index: 3, kind: output, shape index: {}]  }
   0x1   :  { %10 = vsyncpa [#allocation3 + $0x1], 0  ;;  %s648_s12 = smov 0   ;;  %s650_s13 = smov 0  }
   0x2   :  { %s652_s14 = smov 0   ;;  %s654_s15 = smov 0  }
   0x3 LB: > { %s669_s16 = sadd.s32 4294967295, %s620_s15   ;;  %s451_s17 = sadd.s32 4294967294, %s620_s15   ;;  %s620_s15 = sphi %s654_s15, %s776_s15   ;;  %s616_s14 = sphi %s652_s14, %s775_s14   ;;  %s612_s13 = sphi %s650_s13, %s774_s13   ;;  %s608_s12 = sphi %s648_s12, %s773_s12  }
   0x4   : > { %s673_s18 = sadd.s32 1, %s620_s15   ;;  %s96_s19 = sadd.s32 1, %s616_s14 }
   0x5   : > { %s93_s20 = ssub.s32 %s620_s15, %s673_s18  ;;  %p106_p0 = scmp.ne.s32.totalorder %s616_s14, %s612_s13 }
   0x6   : > { %p94_p1 = scmp.eq.s32.totalorder %s93_s20, 0  ;;  %p107_p2 = scmp.eq.s32.totalorder %s669_s16, 1 }
   0x7   : > { %p112_p3 = scmp.ne.s32.totalorder %s612_s13, %s608_s12  ;;  %p113_p4 = scmp.eq.s32.totalorder %s451_s17, 1 }
   0x8   : > { %s684_s21 = scalar_select %p94_p1, %s616_s14, %s96_s19  }
   0x9   : > { %p686_p5 = por %p107_p2, %p106_p0  ;;  %p690_p6 = por %p113_p4, %p112_p3 }
   0xa   : > { %p454_p7 = scmp.ge.s32.totalorder %s620_s15, 1  ;;  %p150_p8 = scmp.lt.s32.totalorder %s620_s15, 3 }
   0xc   : > { %p151_p9 = pnand %p454_p7, %p150_p8 }
   0xd   : > { %s456_s24 = sshll.u32 (!%p151_p9), %s669_s16, 4  ;;  %v622_v0 = vmov (!%p151_p9), 0.0   ;;  %vm623_vm0 = vmmov (!%p151_p9), 0   ;;  %vm252_vm1 = vcmask (!%p151_p9), 523264   ;;  %v555_v17 = vld [vmem:[%s767_s0] sm:$0xff] (!%p151_p9)   ;;  %p184_p11 = scmp.lt.s32.totalorder (!%p151_p9), %s669_s16, 1  ;;  %v345_v43 = vlaneseq (!%p151_p9) }
   0xe   : > { %154 = sbr.rel (%p151_p9) target bundleno = 380 (0x17c), region = 32  ;;  %483 = vmatprep.subr.bf16.mxu0 (!%p151_p9), %v622_v0  ;;  %p179_p10 = scmp.lt.s32.totalorder (!%p151_p9), %s456_s24, 31  ;;  %499 = vmatprep.mubr.msk.bf16.mxu0 (!%p151_p9), %vm623_vm0, %v622_v0 }
   0xf   : > { %v346_v44 = vshrl.u32 (!%p151_p9), %v345_v43, 7  ;;  %s175_s9 = sand.u32 (!%p151_p9), 1, %s612_s13   ;;  %s471_s19 = sshll.u32 (!%p151_p9), %s669_s16, 7 }
  0x10   : > { %s455_s10 = sshll.u32 (!%p151_p9), %s175_s9, 4  ;;  %s726_s26 = scalar_lea.sflag (!%p151_p9), [#allocation3], %s175_s9 }
  0x11   : > { %v347_v46 = vsub.s32 (!%p151_p9), 0, %v346_v44  ;;  %s177_s11 = scalar_lea.vmem (!%p151_p9), [#allocation2], %s455_s10 }
  0x12   : > { %s377_s17 = sshll.u32 (!%p151_p9), %s177_s11, 4  ;;  %s719_s17 = int_to_ptr.vmem [resolvable:$true] %s377_s17 }
  0x13   : > { %s558_s27 = scalar_lea.vmem (!%p151_p9), %s719_s17, 256 }
  0x14   : > { %p559_p12 = scmp.ne.s32.totalorder (!%p151_p9), %s719_s17, %s558_s27 }
  0x15   : > { %s778_s24 = smov (!%p179_p10, %s456_s24), 31 }
  0x16   : > { %s457_s25 = sshll.u32 %s778_s24, 2  ;;  %p560_p13 = pnand %p559_p12, %p686_p5 }
  0x17   : > { %s182_s28 = scalar_lea.vmem %s768_s1, %s457_s25  ;;  %s724_s25 = scalar_lea.hbm %s770_s3, %s471_s19 }
  0x18   : > { %v547_v1 = vld [vmem:[%s182_s28] sm:$0xff]   ;;  %v548_v3 = vld [vmem:[%s182_s28 + $0x8] sm:$0xff]   ;;  %v549_v5 = vld [vmem:[%s182_s28 + $0x10] sm:$0xff]   ;;  %s185_s4 = scalar_select %p184_p11, %s669_s16, 1 }
  0x19   : > { %v257_v2 = vsel %vm252_vm1, %v547_v1, 0  ;;  %v260_v4 = vsel %vm252_vm1, %v548_v3, 0  ;;  %v263_v6 = vsel %vm252_vm1, %v549_v5, 0  ;;  %v550_v7 = vld [vmem:[%s182_s28 + $0x18] sm:$0xff]   ;;  %v551_v9 = vld [vmem:[%s182_s28 + $0x20] sm:$0xff]   ;;  %v552_v11 = vld [vmem:[%s182_s28 + $0x28] sm:$0xff]   ;;  %p561_p0 = pneg %p560_p13 }
  0x1a   : > { %484 = vmatpush3.bf16.xpose.msra.mxu0 %v257_v2  ;;  %v266_v8 = vsel %vm252_vm1, %v550_v7, 0  ;;  %v269_v10 = vsel %vm252_vm1, %v551_v9, 0  ;;  %v272_v12 = vsel %vm252_vm1, %v552_v11, 0  ;;  %v553_v13 = vld [vmem:[%s182_s28 + $0x30] sm:$0xff]   ;;  %v554_v15 = vld [vmem:[%s182_s28 + $0x38] sm:$0xff]   ;;  %s458_s5 = sshll.u32 %s185_s4, 1 }
  0x1b   : > { %485 = vmatprep.subr.bf16.mxu0 %v622_v0  ;;  %v275_v14 = vsel %vm252_vm1, %v553_v13, 0  ;;  %v278_v16 = vsel %vm252_vm1, %v554_v15, 0  ;;  %s187_s8 = scalar_lea.vmem %s769_s2, %s458_s5  ;;  %s624_s16 = smov [#allocation2]  }
  0x1c   : > { %v343_v45 = vld [vmem:[%s187_s8] sm:$0x1]  ;;  %v469_v50 = vld [vmem:[%s187_s8 + $0x1] ss:$0 sm:$0xff]  ;;  %s562_s28 = sshll.u32 %s624_s16, 4  ;;  %s563_s28 = int_to_ptr.vmem [resolvable:$false] %s562_s28 }
  0x1d   : > { %s564_s29 = scalar_lea.vmem %s563_s28, 512  ;;  %p565_p1 = scmp.lt.s32.totalorder %s719_s17, %s563_s28 }
  0x1e   : > { %p566_p2 = scmp.lt.s32.totalorder %s564_s29, %s558_s27 }
  0x20   : > { %p567_p3 = por %p566_p2, %p565_p1 }
  0x22   : > { %486 = vmatpush3.bf16.xpose.msra.mxu0 %v260_v4  ;;  %p568_p4 = pnand %p567_p3, %p561_p0 }
  0x23   : > { %487 = vmatprep.subr.bf16.mxu0 %v622_v0 }
  0x2a   : > { %488 = vmatpush3.bf16.xpose.msra.mxu0 %v263_v6 }
  0x2b   : > { %489 = vmatprep.subr.bf16.mxu0 %v622_v0 }
  0x32   : > { %490 = vmatpush3.bf16.xpose.msra.mxu0 %v266_v8 }
  0x33   : > { %491 = vmatprep.subr.bf16.mxu0 %v622_v0 }
  0x3a   : > { %492 = vmatpush3.bf16.xpose.msra.mxu0 %v269_v10 }
  0x3b   : > { %493 = vmatprep.subr.bf16.mxu0 %v622_v0 }
  0x42   : > { %494 = vmatpush3.bf16.xpose.msra.mxu0 %v272_v12 }
  0x43   : > { %495 = vmatprep.subr.bf16.mxu0 %v622_v0 }
  0x4a   : > { %496 = vmatpush3.bf16.xpose.msra.mxu0 %v275_v14 }
  0x4b   : > { %497 = vmatprep.subr.bf16.mxu0 %v622_v0 }
  0x52   : > { %498 = vmatpush3.bf16.xpose.msra.mxu0 %v278_v16 }
  0x59   : > { %500 = vmatmul.mubr.msk.bf16.vlgmr.msra.gmra.mrb[0].mxu0 %vm252_vm1, %v555_v17 }
 0x12c   : > { %v314_v18 = vpop.f32.mrb[0].mxu0 }
 0x12d   : > { %v501_v19 = vpop.f32.mrb[1].mxu0 }
 0x12e   : > { %v317_v20 = vpop.f32.mrb[2].mxu0 }
 0x12f   : > { %v321_v21 = vadd.f32 %v317_v20, %v314_v18  ;;  %v502_v22 = vpop.f32.mrb[3].mxu0 }
 0x131   : > { %v322_v23 = vrot.slane %v321_v21, 4 }
 0x133   : > { %v323_v24 = vadd.f32 %v322_v23, %v321_v21 }
 0x135   : > { %v324_v25 = vrot.slane %v323_v24, 2 }
 0x137   : > { %v325_v26 = vadd.f32 %v324_v25, %v323_v24 }
 0x139   : > { %v326_v27 = vrot.slane %v325_v26, 1 }
 0x13b   : > { %v327_v28 = vadd.f32 %v326_v27, %v325_v26 }
 0x13d   : > { %v328_v29 = vmul.f32 0.0625, %v327_v28 }
 0x13f   : > { %v329_v30 = vsub.f32 %v314_v18, %v328_v29  ;;  %v330_v31 = vsub.f32 %v317_v20, %v328_v29 }
 0x141   : > { %v331_v32 = vmul.f32 %v329_v30, %v329_v30  ;;  %v332_v33 = vmul.f32 %v330_v31, %v330_v31 }
 0x143   : > { %v333_v34 = vadd.f32 %v332_v33, %v331_v32 }
 0x145   : > { %v334_v35 = vrot.slane %v333_v34, 4 }
 0x147   : > { %v335_v36 = vadd.f32 %v334_v35, %v333_v34 }
 0x149   : > { %v336_v37 = vrot.slane %v335_v36, 2 }
 0x14b   : > { %v337_v38 = vadd.f32 %v336_v37, %v335_v36 }
 0x14d   : > { %v338_v39 = vrot.slane %v337_v38, 1 }
 0x14f   : > { %v339_v40 = vadd.f32 %v338_v39, %v337_v38 }
 0x151   : > { %v340_v41 = vmul.f32 0.0625, %v339_v40 }
 0x153   : > { %v341_v42 = vadd.f32 1e-05, %v340_v41 }
 0x155   : > { %556 = vrsqrt.f32 %v341_v42 }
 0x15f   : > { %v557_v47 = vpop.eup %556 }
 0x160   : > { %v344_v48 = vmul.f32 %v557_v47, %v343_v45 }
 0x162   : > { %v348_v49 = vrot.slane %v344_v48, %v347_v46 }
 0x164   : > { %v349_v51 = vmul.f32 %v348_v49, %v329_v30  ;;  %v350_v52 = vmul.f32 %v348_v49, %v330_v31 }
 0x166   : > { %v356_v53 = vadd.f32 %v469_v50, %v349_v51  ;;  %v357_v54 = vadd.f32 %v469_v50, %v350_v52 }
 0x168   : > { %v358_v55 = vmul.f32 0.01, %v356_v53  ;;  %v359_v56 = vmul.f32 0.01, %v357_v54 }
 0x16a   : > { %v360_v57 = vmax.f32 %v356_v53, %v358_v55  ;;  %v361_v58 = vmax.f32 %v357_v54, %v359_v56 }
 0x16c   : > { %362 = vst [vmem:[%s177_s11] sm:$0xff] %v360_v57  ;;  %363 = vst [vmem:[%s177_s11 + $0x8] sm:$0xff] %v361_v58 }
 0x16d   : > { %571 = shalt.err (!%p568_p4)
}
 0x16e   : > { %s572_s30 = scalar_lea.hbm %s724_s25, 256  ;;  %s576_s6 = scalar_lea.hbm %s770_s3, 512 }
 0x16f   : > { %p573_p7 = scmp.ne.s32.totalorder %s724_s25, %s572_s30  ;;  %p577_p10 = scmp.lt.u32.totalorder %s724_s25, %s770_s3 }
 0x170   : > { %p578_p11 = scmp.lt.u32.totalorder %s576_s6, %s572_s30  ;;  %p580_p13 = scmp.lt.u32.totalorder %s572_s30, %s724_s25 }
 0x171   : > { %p574_p8 = pnand %p573_p7, %p686_p5 }
 0x172   : > { %p579_p12 = por %p578_p11, %p577_p10 }
 0x173   : > { %p575_p9 = pneg %p574_p8 }
 0x174   : > { %p581_p0 = por %p580_p13, %p579_p12 }
 0x176   : > { %p582_p1 = pnand %p581_p0, %p575_p9 }
 0x178   : > { %585 = shalt.err (!%p582_p1)
}
 0x179   : > { %s625_s9 = smov 128   ;;  %s626_s10 = smov 256  }
 0x17a   : > { %s627_s11 = smov 8  }
 0x17b   : > { %503 = dma.vmem_to_hbm [thread:$0]  (%p686_p5), %s719_s17, 256, %s724_s25, %s726_s26, %s625_s9, %s626_s10, %s627_s11  }
 0x17c PF: > { %p509_p2 = scmp.ge.s32.totalorder %s620_s15, 2  ;;  %s392_s19 = sand.u32 1, %s608_s12  }
 0x17d   : > { %s393_s20 = scalar_lea.sflag [#allocation3], %s392_s19 }
 0x17e   : > { %p506_p3 = pnand %p509_p2, %p690_p6 }
 0x180   : > { %603 = dma.done.wait (!%p506_p3), %s393_s20, 256  }
 0x181   : > { %605 = vsyncadd (!%p506_p3), %s393_s20, 4294967040  ;;  %p13_p4 = scmp.ge.s32.totalorder %s673_s18, 4   ;;  %s773_s12 = smov %s612_s13 }
 0x182   : > { %s774_s13 = smov %s616_s14  ;;  %s775_s14 = smov %s684_s21 }
 0x183   : > { %s776_s15 = smov %s673_s18  ;;  %15 = sbr.rel (!%p13_p4) target bundleno = 3 (0x3), region = 70 }
 0x18a   :  { %398 = vsyncpa [#allocation3], 1 }
 0x18b   :  { %400 = vsyncpa [#allocation3 + $0x1], 1 }

</bundles_post_ra>
